<compile_context>
chip_gen: v5e
topology: v5e:2x2
jax: 0.10.0
libtpu: 0.0.40
codegen_flags: <defaults>
</compile_context>

<pallas_src>
import functools

import jax
import jax.numpy as jnp
import numpy as np
from jax import lax
from jax.experimental import pallas as pl
from jax.experimental.pallas import tpu as pltpu

BETA = 1.0  # stands in for cfg.TRAINING.beta


def prt_kernel(br_ref, neg_ref, ts_ref, out_ref, *, beta, batch_size):
    """One (TB, S, D) slab of batch rows per grid step.

    br_ref : (TB, S, D)  embeddings of these bridges (bf16 or f32)
    neg_ref: (TB, J, D)  gathered negatives for the J = S-2 interior segments
    ts_ref : (TB, S, 1)  f32 timestamps
    out_ref: (1, 1, 128) f32 partial hinge-sum tile (lane-dense, one per step)
    """
    TB, S, _ = br_ref.shape
    J = S - 2

    br = br_ref[...].astype(jnp.float32)          # (TB, S, D), upcast once
    head = br[:, 0:1, :]                          # (TB, 1, D)
    tail = br[:, S - 1:S, :]                      # (TB, 1, D)
    pos = br[:, 1:S - 1, :]                       # (TB, J, D)
    neg = neg_ref[...].astype(jnp.float32)        # (TB, J, D)

    ts = ts_ref[...]                              # (TB, S, 1) f32
    bh = ts[:, 0:1, :]                            # (TB, 1, 1)
    bt = ts[:, S - 1:S, :]                        # (TB, 1, 1)
    bp = ts[:, 1:S - 1, :]                        # (TB, J, 1)

    alpha = (bp - bh) / (bt - bh)                 # (TB, J, 1)
    sigma = alpha * (bt - bp)                     # (TB, J, 1)
    inv_denom = 1.0 / (2.0 * sigma * sigma)       # exact divide (hinge-sign safe)

    # Bridge interpolation baseline, broadcast (TB,1,D) against (TB,J,1).
    base = (1.0 - alpha) * head + alpha * tail    # (TB, J, D)

    xp = pos - base
    xn = neg - base
    pos_sq = jnp.sum(xp * xp, axis=-1, keepdims=True)   # (TB, J, 1)
    neg_sq = jnp.sum(xn * xn, axis=-1, keepdims=True)   # (TB, J, 1)

    # pos_dis - neg_dis + beta == (neg_sq - pos_sq) * inv_denom + beta
    cur = (neg_sq - pos_sq) * inv_denom + beta
    hinge = jnp.maximum(cur, 0.0)

    # Zero out rows past the true batch size (ragged last block only).
    row_ids = pl.program_id(0) * TB + lax.broadcasted_iota(jnp.int32, (TB, J, 1), 0)
    hinge = jnp.where(row_ids < batch_size, hinge, 0.0)

    part = jnp.sum(hinge)                                # scalar

    # Broadcast the scalar partial into this step's private lane-dense tile.
    out_ref[...] = jnp.full(out_ref.shape, part, dtype=out_ref.dtype)


def prt_forward_pallas(bridges, b_inx, neg_i, neg_j, beta=BETA,
                       emb_dtype=jnp.bfloat16):
    """bridges: [B, S, D] float32, b_inx: [B, S] float32 timestamps,
    neg_i/neg_j: [B, S-2] int32 negative indices (i' != i, j' != j)."""
    B, S, D = bridges.shape
    assert S > 2
    J = S - 2

    # Embeddings as bf16 for HBM traffic (upcast to f32 inside the kernel).
    bridges_io = bridges.astype(emb_dtype)                         # [B, S, D]
    # TODO(synk): negative gather stays in the wrapper (host-side random.choice
    # has no in-kernel equivalent; data-dependent per-segment gather would need
    # one manual DMA per segment).
    neg_io = bridges_io[neg_i.reshape(-1), neg_j.reshape(-1), :].reshape(B, J, D)
    ts = b_inx.astype(jnp.float32)[..., None]                      # [B, S, 1]

    # NOTE: with production embedding dims (D >= 128, multiple of 128) the
    # lane axis is fully dense; the demo D=32 only uses 32/128 lanes.

    # Pick the biggest row-block that keeps double-buffered inputs well under
    # the smallest default scoped-VMEM budget (16 MiB on v5e); cap at 256 rows
    # to bound vreg pressure on the (TB, J, D) elementwise math.
    emb_bytes = jnp.dtype(emb_dtype).itemsize
    row_bytes = (S * D + J * D) * emb_bytes + S * 4
    TB = int(max(1, min(B, 256, (4 << 20) // max(row_bytes, 1))))
    G = pl.cdiv(B, TB)

    vmem_need = 2 * 2 * TB * row_bytes + 2 * 128 * 4 + (2 << 20)
    compiler_kwargs = dict(dimension_semantics=("parallel",))
    if vmem_need > (16 << 20):
        compiler_kwargs["vmem_limit_bytes"] = int(
            min(max(vmem_need, 32 << 20), 48 << 20))
    compiler_params = pltpu.CompilerParams(**compiler_kwargs)

    kernel = functools.partial(prt_kernel, beta=float(beta), batch_size=B)

    partials = pl.pallas_call(
        kernel,
        out_shape=jax.ShapeDtypeStruct((G, 1, 128), jnp.float32),
        grid=(G,),
        in_specs=[
            pl.BlockSpec((TB, S, D), lambda g: (g, 0, 0)),   # bridge rows
            pl.BlockSpec((TB, J, D), lambda g: (g, 0, 0)),   # negative rows
            pl.BlockSpec((TB, S, 1), lambda g: (g, 0, 0)),   # timestamp rows
        ],
        out_specs=pl.BlockSpec((1, 1, 128), lambda g: (g, 0, 0)),
        compiler_params=compiler_params,
    )(bridges_io, neg_io, ts)

    # Tiny final reduction over G scalars + batch-size normalization in JAX.
    return jnp.sum(partials[:, 0, 0]) / B


def prt_forward_reference(bridges, b_inx, neg_i, neg_j, beta=BETA):
    """Plain-numpy port of the PyTorch loop (same negatives)."""
    bridges = np.asarray(bridges, dtype=np.float32)
    b_inx = np.asarray(b_inx, dtype=np.float32)
    neg_i = np.asarray(neg_i)
    neg_j = np.asarray(neg_j)
    B, S, _ = bridges.shape
    loss = 0.0
    for i in range(B):
        head = bridges[i, 0]
        tail = bridges[i, -1]
        bh = b_inx[i, 0]
        bt = b_inx[i, -1]
        for jj, j in enumerate(range(1, S - 1)):
            bp = b_inx[i, j]
            alpha = (bp - bh) / (bt - bh)
            sigma = alpha * (bt - bp)

            def dist(mid):
                x = mid - (1.0 - alpha) * head - alpha * tail
                return -(np.linalg.norm(x) ** 2) / (2.0 * sigma ** 2)

            pos_dis = dist(bridges[i, j])
            neg_dis = dist(bridges[int(neg_i[i, jj]), int(neg_j[i, jj])])
            cur = pos_dis - neg_dis + beta
            if cur > 0:
                loss += cur
    return loss / B


if __name__ == "__main__":
    B, S, D = 2, 8, 32          # batch=2, num_seg=8 (>2), hidden=32
    J = S - 2

    key = jax.random.PRNGKey(0)
    k1, k2, k3, k4 = jax.random.split(key, 4)

    bridges = jax.random.normal(k1, (B, S, D), dtype=jnp.float32)
    # strictly increasing timestamps per row (so alpha in (0,1), sigma != 0)
    steps = jax.random.uniform(k2, (B, S), minval=0.5, maxval=1.5,
                               dtype=jnp.float32)
    b_inx = jnp.cumsum(steps, axis=1)

    # deterministic "random_select_negative": uniform over {i' != i, j' != j}
    ri = jax.random.randint(k3, (B, J), 0, B - 1)
    rj = jax.random.randint(k4, (B, J), 0, S - 1)
    i_grid = jnp.arange(B)[:, None]                  # positive row index
    j_grid = jnp.arange(1, S - 1)[None, :]           # positive column index
    neg_i = jnp.where(ri >= i_grid, ri + 1, ri).astype(jnp.int32)
    neg_j = jnp.where(rj >= j_grid, rj + 1, rj).astype(jnp.int32)

    loss = prt_forward_pallas(bridges, b_inx, neg_i, neg_j, beta=BETA)
    loss = jax.block_until_ready(loss)

    # Reference consumes the same bf16-rounded embeddings the kernel read, so
    # the check isolates kernel correctness from the intentional bf16 I/O cast.
    bridges_rounded = bridges.astype(jnp.bfloat16).astype(jnp.float32)
    ref = prt_forward_reference(bridges_rounded, b_inx, neg_i, neg_j, beta=BETA)
    np.testing.assert_allclose(np.asarray(loss), ref, rtol=1e-4, atol=1e-4)

    print("KERNEL_OK")
</pallas_src>

<mosaic_0001>
module attributes {stable_mosaic.version = 11 : i64} {
  func.func @prt_kernel(%arg0: i32, %arg1: memref<2x8x32xbf16, #tpu.memory_space<vmem>>, %arg2: memref<2x6x32xbf16, #tpu.memory_space<vmem>>, %arg3: memref<2x8x1xf32, #tpu.memory_space<vmem>>, %arg4: memref<1x1x128xf32, #tpu.memory_space<vmem>>) attributes {dimension_semantics = [#tpu.dimension_semantics<parallel>], iteration_bounds = array<i64: 1>, scalar_prefetch = 0 : i64, scratch_operands = 0 : i64, tpu.core_type = #tpu.core_type<tc>, window_params = [{transform_indices = @transform_0, window_bounds = array<i64: 2, 8, 32>}, {transform_indices = @transform_1, window_bounds = array<i64: 2, 6, 32>}, {transform_indices = @transform_2, window_bounds = array<i64: 2, 8, 1>}, {transform_indices = @transform_3, window_bounds = array<i64: 1, 1, 128>}]} {
    %c0 = arith.constant 0 : index
    %c0_0 = arith.constant 0 : index
    %c0_1 = arith.constant 0 : index
    %0 = vector.load %arg1[%c0, %c0_0, %c0_1] : memref<2x8x32xbf16, #tpu.memory_space<vmem>>, vector<2x8x32xbf16>
    %1 = arith.extf %0 : vector<2x8x32xbf16> to vector<2x8x32xf32>
    %2 = vector.extract_strided_slice %1 {offsets = [0, 0, 0], sizes = [2, 1, 32], strides = [1, 1, 1]} : vector<2x8x32xf32> to vector<2x1x32xf32>
    %3 = vector.extract_strided_slice %1 {offsets = [0, 7, 0], sizes = [2, 1, 32], strides = [1, 1, 1]} : vector<2x8x32xf32> to vector<2x1x32xf32>
    %4 = vector.extract_strided_slice %1 {offsets = [0, 1, 0], sizes = [2, 6, 32], strides = [1, 1, 1]} : vector<2x8x32xf32> to vector<2x6x32xf32>
    %c0_2 = arith.constant 0 : index
    %c0_3 = arith.constant 0 : index
    %c0_4 = arith.constant 0 : index
    %5 = vector.load %arg2[%c0_2, %c0_3, %c0_4] : memref<2x6x32xbf16, #tpu.memory_space<vmem>>, vector<2x6x32xbf16>
    %6 = arith.extf %5 : vector<2x6x32xbf16> to vector<2x6x32xf32>
    %c0_5 = arith.constant 0 : index
    %c0_6 = arith.constant 0 : index
    %c0_7 = arith.constant 0 : index
    %7 = vector.load %arg3[%c0_5, %c0_6, %c0_7] : memref<2x8x1xf32, #tpu.memory_space<vmem>>, vector<2x8x1xf32>
    %8 = vector.extract_strided_slice %7 {offsets = [0, 0, 0], sizes = [2, 1, 1], strides = [1, 1, 1]} : vector<2x8x1xf32> to vector<2x1x1xf32>
    %9 = vector.extract_strided_slice %7 {offsets = [0, 7, 0], sizes = [2, 1, 1], strides = [1, 1, 1]} : vector<2x8x1xf32> to vector<2x1x1xf32>
    %10 = vector.extract_strided_slice %7 {offsets = [0, 1, 0], sizes = [2, 6, 1], strides = [1, 1, 1]} : vector<2x8x1xf32> to vector<2x6x1xf32>
    %11 = vector.broadcast %8 : vector<2x1x1xf32> to vector<2x6x1xf32>
    %12 = arith.subf %10, %11 : vector<2x6x1xf32>
    %13 = arith.subf %9, %8 : vector<2x1x1xf32>
    %14 = vector.broadcast %13 : vector<2x1x1xf32> to vector<2x6x1xf32>
    %15 = arith.divf %12, %14 : vector<2x6x1xf32>
    %16 = vector.broadcast %9 : vector<2x1x1xf32> to vector<2x6x1xf32>
    %17 = arith.subf %16, %10 : vector<2x6x1xf32>
    %18 = arith.mulf %15, %17 : vector<2x6x1xf32>
    %cst = arith.constant 2.000000e+00 : f32
    %19 = vector.broadcast %cst : f32 to vector<2x6x1xf32>
    %20 = arith.mulf %19, %18 : vector<2x6x1xf32>
    %21 = arith.mulf %20, %18 : vector<2x6x1xf32>
    %cst_8 = arith.constant 1.000000e+00 : f32
    %22 = vector.broadcast %cst_8 : f32 to vector<2x6x1xf32>
    %23 = arith.divf %22, %21 : vector<2x6x1xf32>
    %cst_9 = arith.constant 1.000000e+00 : f32
    %24 = vector.broadcast %cst_9 : f32 to vector<2x6x1xf32>
    %25 = arith.subf %24, %15 : vector<2x6x1xf32>
    %26 = vector.broadcast %25 : vector<2x6x1xf32> to vector<2x6x32xf32>
    %27 = vector.broadcast %2 : vector<2x1x32xf32> to vector<2x6x32xf32>
    %28 = arith.mulf %26, %27 : vector<2x6x32xf32>
    %29 = vector.broadcast %15 : vector<2x6x1xf32> to vector<2x6x32xf32>
    %30 = vector.broadcast %3 : vector<2x1x32xf32> to vector<2x6x32xf32>
    %31 = arith.mulf %29, %30 : vector<2x6x32xf32>
    %32 = arith.addf %28, %31 : vector<2x6x32xf32>
    %33 = arith.subf %4, %32 : vector<2x6x32xf32>
    %34 = arith.subf %6, %32 : vector<2x6x32xf32>
    %35 = arith.mulf %33, %33 : vector<2x6x32xf32>
    %cst_10 = arith.constant dense<0.000000e+00> : vector<2x6xf32>
    %36 = vector.multi_reduction <add>, %35, %cst_10 [2] : vector<2x6x32xf32> to vector<2x6xf32>
    %37 = vector.shape_cast %36 : vector<2x6xf32> to vector<2x6x1xf32>
    %38 = arith.mulf %34, %34 : vector<2x6x32xf32>
    %cst_11 = arith.constant dense<0.000000e+00> : vector<2x6xf32>
    %39 = vector.multi_reduction <add>, %38, %cst_11 [2] : vector<2x6x32xf32> to vector<2x6xf32>
    %40 = vector.shape_cast %39 : vector<2x6xf32> to vector<2x6x1xf32>
    %41 = arith.subf %40, %37 : vector<2x6x1xf32>
    %42 = arith.mulf %41, %23 : vector<2x6x1xf32>
    %cst_12 = arith.constant 1.000000e+00 : f32
    %43 = vector.broadcast %cst_12 : f32 to vector<2x6x1xf32>
    %44 = arith.addf %42, %43 : vector<2x6x1xf32>
    %cst_13 = arith.constant 0.000000e+00 : f32
    %45 = vector.broadcast %cst_13 : f32 to vector<2x6x1xf32>
    %46 = arith.maximumf %44, %45 : vector<2x6x1xf32>
    %c2_i32 = arith.constant 2 : i32
    %47 = arith.muli %arg0, %c2_i32 : i32
    %48 = tpu.iota {dimensions = array<i32: 0>} : vector<2x6x1xi32>
    %49 = vector.broadcast %47 : i32 to vector<2x6x1xi32>
    %50 = arith.addi %49, %48 : vector<2x6x1xi32>
    %c2_i32_14 = arith.constant 2 : i32
    %51 = vector.broadcast %c2_i32_14 : i32 to vector<2x6x1xi32>
    %52 = arith.cmpi slt, %50, %51 : vector<2x6x1xi32>
    %cst_15 = arith.constant 0.000000e+00 : f32
    %53 = vector.broadcast %cst_15 : f32 to vector<2x6x1xf32>
    %54 = arith.select %52, %46, %53 : vector<2x6x1xi1>, vector<2x6x1xf32>
    %55 = vector.shape_cast %54 : vector<2x6x1xf32> to vector<1x2x6x1xf32>
    %cst_16 = arith.constant dense<0.000000e+00> : vector<1xf32>
    %56 = vector.multi_reduction <add>, %55, %cst_16 [1, 2, 3] : vector<1x2x6x1xf32> to vector<1xf32>
    %57 = vector.shape_cast %56 : vector<1xf32> to vector<1x1x1x1xf32>
    %58 = vector.extract %57[0, 0, 0, 0] : f32 from vector<1x1x1x1xf32>
    %59 = vector.broadcast %58 : f32 to vector<1x1x128xf32>
    %c0_17 = arith.constant 0 : index
    %c0_18 = arith.constant 0 : index
    %c0_19 = arith.constant 0 : index
    %60 = vector.load %arg4[%c0_17, %c0_18, %c0_19] : memref<1x1x128xf32, #tpu.memory_space<vmem>>, vector<1x1x128xf32>
    tpu.vector_store %arg4[%c0_17, %c0_18, %c0_19], %59 {strides = array<i32>} : memref<1x1x128xf32, #tpu.memory_space<vmem>>, vector<1x1x128xf32>,
    return
  }
  func.func @transform_0(%arg0: i32) -> (i32, i32, i32) {
    %c0_i32 = arith.constant 0 : i32
    %c0_i32_0 = arith.constant 0 : i32
    %c0_i32_1 = arith.constant 0 : i32
    return %arg0, %c0_i32, %c0_i32_0 : i32, i32, i32
  }
  func.func @transform_1(%arg0: i32) -> (i32, i32, i32) {
    %c0_i32 = arith.constant 0 : i32
    %c0_i32_0 = arith.constant 0 : i32
    %c0_i32_1 = arith.constant 0 : i32
    return %arg0, %c0_i32, %c0_i32_0 : i32, i32, i32
  }
  func.func @transform_2(%arg0: i32) -> (i32, i32, i32) {
    %c0_i32 = arith.constant 0 : i32
    %c0_i32_0 = arith.constant 0 : i32
    %c0_i32_1 = arith.constant 0 : i32
    return %arg0, %c0_i32, %c0_i32_0 : i32, i32, i32
  }
  func.func @transform_3(%arg0: i32) -> (i32, i32, i32) {
    %c0_i32 = arith.constant 0 : i32
    %c0_i32_0 = arith.constant 0 : i32
    %c0_i32_1 = arith.constant 0 : i32
    return %arg0, %c0_i32, %c0_i32_0 : i32, i32, i32
  }
}

</mosaic_0001>

<bundles_post_ra>
// kernel: tpu_custom_call.1
= control target key start
LH: loop header
LB: loop body
LE: loop exit
PB: predicated region body
PF: predicated region fallthrough
CT: control target
= control target key end

     0   :  { %s315_s0 = inlined_call_operand.vmem [shape: bf16[2,8,32], index: 0, kind: input, shape index: {}]   ;;  %s316_s1 = inlined_call_operand.vmem [shape: bf16[2,6,32], index: 1, kind: input, shape index: {}]   ;;  %s317_s2 = inlined_call_operand.vmem [shape: f32[2,8,1], index: 2, kind: input, shape index: {}]   ;;  %s318_s3 = inlined_call_operand.hbm [shape: f32[1,1,128], index: 3, kind: output, shape index: {}]  }
   0x1   :  { %v23_v0 = vld [vmem:[%s317_s2] sm:$0xff]  ;;  %v24_v1 = vld [vmem:[%s317_s2 + $0x8] sm:$0xff] }
   0x2   :  { %8 = vsyncpa [#allocation3], 0  ;;  %v271_v2 = vmov 0   ;;  %v31_v3 = vrot.slane %v23_v0, 1  ;;  %v32_v4 = vrot.slane %v24_v1, 1  ;;  %v25_v11 = vperm.slane %v23_v0, 0 }
   0x3   :  { %236 = vset.pattern.permute.xlu1 %v271_v2  ;;  %235 = vset.pattern.permute.xlu0 %v271_v2  ;;  %v26_v14 = vperm.slane %v24_v1, 0  ;;  %v69_v22 = vperm.slane %v23_v0, 7  ;;  %v70_v25 = vperm.slane %v24_v1, 7  ;;  %v228_v43 = vld [vmem:[%s315_s0] sm:$0xff]   ;;  %vm153_vm8 = vcmask 260097   ;;  %s218_s23 = sshll.u32 %s318_s3, 4  ;;  %s219_s23 = int_to_ptr.hbm [resolvable:$true] %s218_s23 }
   0x4   :  { %v35_v5 = vsub.f32 %v23_v0, %v31_v3  ;;  %v36_v6 = vsub.f32 %v24_v1, %v32_v4  ;;  %v27_v26 = vsub.f32 %v23_v0, %v25_v11  ;;  %v229_v44 = vunpack.c.l.bf16 %v228_v43  ;;  %v19_v50 = vld [vmem:[%s316_s1] sm:$0x7]  ;;  %v20_v63 = vld [vmem:[%s316_s1 + $0x4] sm:$0x7]  ;;  %s272_s1 = smov [#allocation2]  }
   0x5   :  { %v28_v29 = vsub.f32 %v24_v1, %v26_v14  ;;  %v71_v32 = vsub.f32 %v69_v22, %v23_v0  ;;  %v72_v35 = vsub.f32 %v70_v25, %v24_v1  ;;  %v230_v52 = vunpack.c.h.bf16 %v228_v43  ;;  %s216_s20 = sshll.u32 %s272_s1, 4  ;;  %s217_s20 = int_to_ptr.vmem [resolvable:$true] %s216_s20 }
   0x6   :  { %v37_v7 = vperm.slane %v35_v5, 7  ;;  %v38_v8 = vperm.slane %v36_v6, 7  ;;  %v135_v45 = vperm.slane %v229_v44, 7  ;;  %v121_v46 = vperm.slane %v229_v44, 0 }
   0x7   :  { %v21_v54 = vunpack.c.l.bf16 %v19_v50  ;;  %v136_v56 = vperm.slane %v230_v52, 7  ;;  %v122_v57 = vperm.slane %v230_v52, 0  ;;  %vm162_vm9 = vcmask 259072  }
   0x8   :  { %237 = vrcp.f32 %v37_v7  ;;  %vm44_vm0 = vweird.f32 %v37_v7  ;;  %v50_v13 = vand.u32 2147483648, %v37_v7  ;;  %v48_v17 = vand.u32 2147483647, %v37_v7 }
   0x9   :  { %239 = vrcp.f32 %v38_v8  ;;  %v65_v18 = vand.u32 2147483648, %v38_v8  ;;  %vm59_vm2 = vweird.f32 %v38_v8  ;;  %v63_v20 = vand.u32 2147483647, %v38_v8 }
   0xa   :  { %v51_v23 = vor.u32 1.1754944e-38, %v50_v13  ;;  %vm49_vm5 = vcmp.eq.f32.partialorder %v48_v17, 8.507059e+37  ;;  %v22_v6 = vunpack.c.l.bf16 %v20_v63 }
   0xb   :  { %v66_v28 = vor.u32 1.1754944e-38, %v65_v18  ;;  %vm64_vm7 = vcmp.eq.f32.partialorder %v63_v20, 8.507059e+37 }
   0xe   :  { %v238_v9 = vpop.eup %237 }
   0xf   :  { %v240_v10 = vpop.eup %239  ;;  %v40_v12 = vmul.f32 %v238_v9, %v37_v7  ;;  %vm45_vm1 = vweird.f32 %v238_v9 }
  0x10   :  { %v55_v15 = vmul.f32 %v240_v10, %v38_v8  ;;  %vm60_vm3 = vweird.f32 %v240_v10  ;;  %vm46_vm4 = vmor %vm44_vm0, %vm45_vm1 }
  0x11   :  { %v41_v16 = vsub.f32 1.0, %v40_v12  ;;  %vm61_vm6 = vmor %vm59_vm2, %vm60_vm3  ;;  %vm196_vm2 = vcmask 5120  }
  0x12   :  { %v56_v19 = vsub.f32 1.0, %v55_v15 }
  0x13   :  { %v42_v21 = vmul.f32 %v238_v9, %v41_v16 }
  0x14   :  { %v57_v24 = vmul.f32 %v240_v10, %v56_v19 }
  0x15   :  { %v43_v27 = vadd.f32 %v238_v9, %v42_v21 }
  0x16   :  { %v58_v30 = vadd.f32 %v240_v10, %v57_v24 }
  0x17   :  { %v47_v31 = vsel %vm46_vm4, %v238_v9, %v43_v27 }
  0x18   :  { %v52_v33 = vsel %vm49_vm5, %v51_v23, %v47_v31  ;;  %v62_v34 = vsel %vm61_vm6, %v240_v10, %v58_v30 }
  0x19   :  { %v53_v36 = vmul.f32 %v52_v33, %v27_v26  ;;  %v67_v37 = vsel %vm64_vm7, %v66_v28, %v62_v34 }
  0x1a   :  { %v68_v38 = vmul.f32 %v67_v37, %v28_v29 }
  0x1b   :  { %127 = vperm.xlu1 %236, %v53_v36   ;;  %v73_v39 = vmul.f32 %v71_v32, %v53_v36  ;;  %v109_v40 = vsub.f32 1.0, %v53_v36 }
  0x1c   :  { %v74_v41 = vmul.f32 %v72_v35, %v68_v38  ;;  %v110_v42 = vsub.f32 1.0, %v68_v38 }
  0x1d   :  { %113 = vperm.xlu0 %235, %v109_v40   ;;  %v75_v14 = vmul.f32 2.0, %v73_v39 }
  0x1e   :  { %v76_v16 = vmul.f32 2.0, %v74_v41 }
  0x1f   :  { %v77_v15 = vmul.f32 %v75_v14, %v73_v39 }
  0x20   :  { %v78_v17 = vmul.f32 %v76_v16, %v74_v41 }
  0x21   :  { %241 = vrcp.f32 %v77_v15  ;;  %vm84_vm10 = vweird.f32 %v77_v15  ;;  %v90_v25 = vand.u32 2147483648, %v77_v15  ;;  %v88_v27 = vand.u32 2147483647, %v77_v15 }
  0x22   :  { %243 = vrcp.f32 %v78_v17  ;;  %vm99_vm14 = vweird.f32 %v78_v17  ;;  %v105_v31 = vand.u32 2147483648, %v78_v17  ;;  %v103_v33 = vand.u32 2147483647, %v78_v17 }
  0x23   :  { %132 = vperm.xlu1 %236, %v68_v38   ;;  %v91_v29 = vor.u32 1.1754944e-38, %v90_v25  ;;  %vm89_vm13 = vcmp.eq.f32.partialorder %v88_v27, 8.507059e+37 }
  0x24   :  { %v106_v38 = vor.u32 1.1754944e-38, %v105_v31  ;;  %vm104_vm1 = vcmp.eq.f32.partialorder %v103_v33, 8.507059e+37 }
  0x25   :  { %118 = vperm.xlu0 %235, %v110_v42  }
  0x27   :  { %v242_v18 = vpop.eup %241 }
  0x28   :  { %v80_v19 = vmul.f32 %v242_v18, %v77_v15  ;;  %v244_v20 = vpop.eup %243  ;;  %vm85_vm11 = vweird.f32 %v242_v18 }
  0x29   :  { %v95_v22 = vmul.f32 %v244_v20, %v78_v17  ;;  %vm86_vm12 = vmor %vm84_vm10, %vm85_vm11  ;;  %vm100_vm15 = vweird.f32 %v244_v20 }
  0x2a   :  { %v81_v21 = vsub.f32 1.0, %v80_v19  ;;  %vm101_vm0 = vmor %vm99_vm14, %vm100_vm15 }
  0x2b   :  { %v96_v24 = vsub.f32 1.0, %v95_v22 }
  0x2c   :  { %v82_v23 = vmul.f32 %v242_v18, %v81_v21 }
  0x2d   :  { %v97_v28 = vmul.f32 %v244_v20, %v96_v24 }
  0x2e   :  { %v83_v26 = vadd.f32 %v242_v18, %v82_v23 }
  0x2f   :  { %v98_v32 = vadd.f32 %v244_v20, %v97_v28 }
  0x30   :  { %v87_v30 = vsel %vm86_vm12, %v242_v18, %v83_v26 }
  0x31   :  { %v92_v35 = vsel %vm89_vm13, %v91_v29, %v87_v30  ;;  %v102_v41 = vsel %vm101_vm0, %v244_v20, %v98_v32 }
  0x32   :  { %v179_v39 = vrot.slane %v92_v35, 1  ;;  %v107_v42 = vsel %vm104_vm1, %v106_v38, %v102_v41 }
  0x8d   :  { %v128_v47 = vpop.permute.xlu1 %127 }
  0x8e   :  { %v137_v48 = vmul.f32 %v135_v45, %v128_v47 }
  0x8f   :  { %v114_v49 = vpop.permute.xlu0 %113 }
  0x90   :  { %v123_v51 = vmul.f32 %v121_v46, %v114_v49  ;;  %v180_v46 = vrot.slane %v107_v42, 1 }
  0x92   :  { %v139_v53 = vadd.f32 %v137_v48, %v123_v51 }
  0x94   :  { %v145_v55 = vrot.slane %v139_v53, 1  ;;  %v141_v58 = vsub.f32 %v229_v44, %v139_v53 }
  0x95   :  { %v133_v59 = vpop.permute.xlu1 %132 }
  0x96   :  { %v151_v60 = vmul.f32 %v141_v58, %v141_v58  ;;  %v149_v61 = vsub.f32 %v21_v54, %v145_v55  ;;  %v138_v0 = vmul.f32 %v136_v56, %v133_v59 }
  0x97   :  { %v119_v62 = vpop.permute.xlu0 %118 }
  0x98   :  { %v124_v1 = vmul.f32 %v122_v57, %v119_v62  ;;  %v154_v2 = vsel %vm153_vm8, %v151_v60, 0.0  ;;  %v160_v3 = vmul.f32 %v149_v61, %v149_v61 }
  0x99   :  { %155 = vadd.xlane.f32.xlu2 %v154_v2 }
  0x9a   :  { %v140_v4 = vadd.f32 %v138_v0, %v124_v1  ;;  %v163_v5 = vsel %vm162_vm9, %v160_v3, 0.0 }
  0x9b   :  { %164 = vadd.xlane.f32.xlu0 %v163_v5 }
  0x9c   :  { %v146_v7 = vrot.slane %v140_v4, 1  ;;  %v142_v8 = vsub.f32 %v230_v52, %v140_v4 }
  0x9e   :  { %v152_v9 = vmul.f32 %v142_v8, %v142_v8  ;;  %v150_v10 = vsub.f32 %v22_v6, %v146_v7 }
  0xa0   :  { %v157_v11 = vsel %vm153_vm8, %v152_v9, 0.0  ;;  %v161_v12 = vmul.f32 %v150_v10, %v150_v10 }
  0xa1   :  { %158 = vadd.xlane.f32.xlu2 %v157_v11 }
  0xa2   :  { %v166_v13 = vsel %vm162_vm9, %v161_v12, 0.0 }
  0xa3   :  { %167 = vadd.xlane.f32.xlu1 %v166_v13 }
 0x10c   :  { %v156_v34 = vpop.xlane.xlu2 %155 }
 0x10d   :  { %v171_v36 = vrot.slane %v156_v34, 1 }
 0x10e   :  { %v165_v37 = vpop.xlane.xlu0 %164 }
 0x10f   :  { %v175_v40 = vsub.f32 %v165_v37, %v171_v36 }
 0x111   :  { %v183_v43 = vmul.f32 %v179_v39, %v175_v40 }
 0x113   :  { %v185_v48 = vadd.f32 1.0, %v183_v43 }
 0x114   :  { %v159_v44 = vpop.xlane.xlu2 %158 }
 0x115   :  { %v172_v45 = vrot.slane %v159_v44, 1  ;;  %v187_v51 = vmax.f32 %v185_v48, 0.0 }
 0x116   :  { %v168_v47 = vpop.xlane.xlu1 %167 }
 0x117   :  { %v176_v49 = vsub.f32 %v168_v47, %v172_v45  ;;  %v197_v54 = vsel %vm196_vm2, %v187_v51, 0.0 }
 0x119   :  { %v184_v50 = vmul.f32 %v180_v46, %v176_v49 }
 0x11b   :  { %v186_v52 = vadd.f32 1.0, %v184_v50 }
 0x11d   :  { %v188_v53 = vmax.f32 %v186_v52, 0.0 }
 0x11f   :  { %v198_v55 = vsel %vm196_vm2, %v188_v53, 0.0 }
 0x120   :  { %v199_v56 = vadd.f32 %v198_v55, %v197_v54 }
 0x122   :  { %200 = vadd.xlane.f32.xlu2 %v199_v56 }
 0x195   :  { %v201_v57 = vpop.xlane.xlu2 %200 }
 0x196   :  { %v202_v58 = vrot.slane %v201_v57, 4 }
 0x198   :  { %v203_v59 = vadd.f32 %v202_v58, %v201_v57 }
 0x19a   :  { %v204_v60 = vrot.slane %v203_v59, 2 }
 0x19c   :  { %v205_v61 = vadd.f32 %v204_v60, %v203_v59 }
 0x19e   :  { %v206_v62 = vrot.slane %v205_v61, 1 }
 0x1a0   :  { %v207_v63 = vadd.f32 %v206_v62, %v205_v61 }
 0x1a2   :  { %231 = vpush %v207_v63 }
 0x1d3   :  { %s232_s24 = spop %231 }
 0x1d4   :  { %v209_v0 = vstv %s232_s24 }
 0x1d5   :  { %210 = vst [vmem:[#allocation2] sm:$0x1] %v209_v0 }
 0x1d6   :  { %221 = dma.vmem_to_hbm [thread:$0]  %s217_s20, 16, %s219_s23, [#allocation3]  }
 0x1d7   :  { %269 = dma.done.wait [#allocation3], 16  }
 0x1d8   :  { %270 = vsyncadd [#allocation3], 4294967280 }
 0x1d9   :  { %226 = vsyncpa [#allocation3], 1 }

</bundles_post_ra>
